<compile_context>
chip_gen: v5e
topology: v5e:2x2
jax: 0.10.0
libtpu: 0.0.40
codegen_flags: <defaults>
</compile_context>

<pallas_src>
import jax
import jax.numpy as jnp
from jax.experimental import pallas as pl
from jax.experimental.pallas import tpu as pltpu


def _round_up(a, m):
    return -(-a // m) * m


def _encoder_kernel(xc_ref, w1_ref, b1_ref, w2_ref, b2_ref,
                    w3_ref, b3_ref, w4_ref, b4_ref, w5_ref, b5_ref,
                    out_ref):
    # fc1 (concat already folded by the wrapper; inputs arrive bf16,
    # output padded to 128 lanes so h is always lane-dense).
    h = jnp.dot(xc_ref[...], w1_ref[...], preferred_element_type=jnp.float32)
    b1 = b1_ref[...]
    h = jnp.maximum(h.astype(b1.dtype) + b1, 0.0)     # epilogue dtype = b.dtype

    # fc2..fc4 + ReLU (bf16 MXU inputs, f32 accumulation, bias/ReLU in
    # epilogue dtype: bf16 on v6e/v7x, f32 on v5e).
    for w_ref, b_ref in ((w2_ref, b2_ref), (w3_ref, b3_ref), (w4_ref, b4_ref)):
        h = jnp.dot(h.astype(jnp.bfloat16), w_ref[...],
                    preferred_element_type=jnp.float32)
        b = b_ref[...]
        h = jnp.maximum(h.astype(b.dtype) + b, 0.0)

    # fused heads [fc51 | fc52 | zero-pad] -> one full-width MXU pass and a
    # lane-dense (tm, 128k) unmasked store. Head bias add stays f32.
    out_ref[...] = (jnp.dot(h.astype(jnp.bfloat16), w5_ref[...],
                            preferred_element_type=jnp.float32)
                    + b5_ref[...]).astype(out_ref.dtype)


def _tpu_flavor():
    """Pick epilogue dtype / tile cap from the attached TPU generation."""
    try:
        kind = jax.devices()[0].device_kind.lower()
    except Exception:
        kind = ""
    old_gen = any(t in kind for t in ("v2", "v3", "v4", "v5"))  # no bf16 VPU
    return {
        "epilogue_dtype": jnp.float32 if old_gen else jnp.bfloat16,
        "tm_cap": 256 if old_gen else 512,
    }


def prepare_params(params, *, epilogue_dtype=jnp.float32):
    """One-time param prep:
       - matmul weights stored [D_in, D_out] in bf16,
       - fc1 output zero-padded 64 -> 128 (w1/b1 cols, w2 rows),
       - fc51/fc52 fused and zero-padded to a 128-lane multiple,
       - layer biases cast to the epilogue dtype (head bias stays f32)."""
    def pad_cols(a, width):
        return jnp.pad(a, ((0, 0), (0, width - a.shape[1])))

    def pad_rows(a, height):
        return jnp.pad(a, ((0, height - a.shape[0]), (0, 0)))

    n_latents = params["w51"].shape[1]
    h1_pad = 128
    head_pad = _round_up(2 * n_latents, 128)

    w1 = pad_cols(params["w1"], h1_pad)
    b1 = pad_cols(params["b1"], h1_pad)
    w2 = pad_rows(params["w2"], h1_pad)
    w5 = pad_cols(jnp.concatenate([params["w51"], params["w52"]], axis=1), head_pad)
    b5 = pad_cols(jnp.concatenate([params["b51"], params["b52"]], axis=1), head_pad)

    return {
        "w1": w1.astype(jnp.bfloat16), "b1": b1.astype(epilogue_dtype),
        "w2": w2.astype(jnp.bfloat16), "b2": params["b2"].astype(epilogue_dtype),
        "w3": params["w3"].astype(jnp.bfloat16), "b3": params["b3"].astype(epilogue_dtype),
        "w4": params["w4"].astype(jnp.bfloat16), "b4": params["b4"].astype(epilogue_dtype),
        "w5": w5.astype(jnp.bfloat16), "b5": b5,  # head bias stays f32
        "n_latents": n_latents,
    }


def cort_subcort_encoder_forward(x, c, prep, *, tm_cap=512):
    """x: [B, m1_data_shape], c: [B, cond_shape], prep: prepare_params(...).
    Returns (mu, logvar), each [B, n_latents] f32."""
    B = x.shape[0]
    n_latents = prep["n_latents"]
    out_w = prep["w5"].shape[1]

    # Fold torch.cat into a single fc1 matmul; cast inputs to bf16 here so the
    # per-step input DMA is half-width (they feed the MXU in bf16 anyway).
    xc = jnp.concatenate([x, c], axis=-1).astype(jnp.bfloat16)
    Dxc = xc.shape[1]

    SUB = 16  # bf16 sublane packing granularity
    Bp = _round_up(B, SUB)
    tm = min(Bp, max(SUB, (tm_cap // SUB) * SUB))
    if Bp >= 2 * SUB:
        # Guarantee >=2 grid steps so a dual-TC chip (v7x) shards the
        # "parallel" batch axis; neutral on single-TC v5e/v6e.
        tm = min(tm, max(SUB, _round_up(Bp // 2, SUB)))
    Bp = _round_up(Bp, tm)
    if Bp != B:
        xc = jnp.pad(xc, ((0, Bp - B), (0, 0)))

    weights = (prep["w1"], prep["b1"], prep["w2"], prep["b2"],
               prep["w3"], prep["b3"], prep["w4"], prep["b4"],
               prep["w5"], prep["b5"])

    # Weights/biases: full-array blocks with constant index_map -> DMA'd once,
    # VMEM-resident across grid steps.
    in_specs = ([pl.BlockSpec((tm, Dxc), lambda i: (i, 0))]
                + [pl.BlockSpec(a.shape, lambda i: (0, 0)) for a in weights])

    out = pl.pallas_call(
        _encoder_kernel,
        out_shape=jax.ShapeDtypeStruct((Bp, out_w), jnp.float32),
        grid_spec=pltpu.PrefetchScalarGridSpec(
            num_scalar_prefetch=0,
            grid=(Bp // tm,),
            in_specs=in_specs,
            out_specs=pl.BlockSpec((tm, out_w), lambda i: (i, 0)),
        ),
        compiler_params=pltpu.CompilerParams(
            dimension_semantics=("parallel",)),
    )(xc, *weights)

    return out[:B, :n_latents], out[:B, n_latents:2 * n_latents]


def init_params(key, input_shape, n_latents):
    """Deterministic synthetic init. Weights as [D_in, D_out]; biases [1, D_out] f32."""
    dims = [(input_shape, 64), (64, 128), (128, 256), (256, 512)]
    names = ["1", "2", "3", "4"]
    params = {}
    keys = jax.random.split(key, 6)
    for k, (din, dout), name in zip(keys[:4], dims, names):
        kw, kb = jax.random.split(k)
        scale = 1.0 / jnp.sqrt(din)
        params[f"w{name}"] = jax.random.uniform(kw, (din, dout), jnp.float32, -scale, scale)
        params[f"b{name}"] = jax.random.uniform(kb, (1, dout), jnp.float32, -scale, scale)
    for k, name in zip(keys[4:], ["51", "52"]):
        kw, kb = jax.random.split(k)
        scale = 1.0 / jnp.sqrt(512)
        params[f"w{name}"] = jax.random.uniform(kw, (512, n_latents), jnp.float32, -scale, scale)
        params[f"b{name}"] = jax.random.uniform(kb, (1, n_latents), jnp.float32, -scale, scale)
    return params


def reference_forward(x, c, params):
    """Pure-JAX f32 reference of the same forward pass."""
    h = jnp.concatenate([x, c], axis=-1)
    for name in ["1", "2", "3", "4"]:
        h = jnp.maximum(h @ params[f"w{name}"] + params[f"b{name}"], 0.0)
    return h @ params["w51"] + params["b51"], h @ params["w52"] + params["b52"]


if __name__ == "__main__":
    B = 8                 # batch
    m1_data_shape = 24    # "cortical" feature dim
    cond_shape = 8        # condition dim  -> fc1 input = 32
    n_latents = 16

    key = jax.random.PRNGKey(0)
    kx, kc, kp = jax.random.split(key, 3)
    x = jax.random.normal(kx, (B, m1_data_shape), jnp.float32)
    c = jax.random.normal(kc, (B, cond_shape), jnp.float32)
    params = init_params(kp, m1_data_shape + cond_shape, n_latents)

    flavor = _tpu_flavor()
    prep = prepare_params(params, epilogue_dtype=flavor["epilogue_dtype"])

    mu, logvar = cort_subcort_encoder_forward(x, c, prep, tm_cap=flavor["tm_cap"])
    mu = jax.block_until_ready(mu)
    logvar = jax.block_until_ready(logvar)

    # f32 reference; tolerance covers bf16 matmul inputs + bf16 epilogue
    # (f32 accumulation throughout).
    mu_ref, logvar_ref = reference_forward(x, c, params)
    assert jnp.allclose(mu, mu_ref, atol=3e-2, rtol=3e-2), \
        float(jnp.max(jnp.abs(mu - mu_ref)))
    assert jnp.allclose(logvar, logvar_ref, atol=3e-2, rtol=3e-2), \
        float(jnp.max(jnp.abs(logvar - logvar_ref)))

    print("KERNEL_OK")
</pallas_src>

<mosaic_0001>
module attributes {stable_mosaic.version = 11 : i64} {
  func.func @_encoder_kernel(%arg0: i32, %arg1: memref<16x32xbf16, #tpu.memory_space<vmem>>, %arg2: memref<32x128xbf16, #tpu.memory_space<vmem>>, %arg3: memref<1x128xbf16, #tpu.memory_space<vmem>>, %arg4: memref<128x128xbf16, #tpu.memory_space<vmem>>, %arg5: memref<1x128xbf16, #tpu.memory_space<vmem>>, %arg6: memref<128x256xbf16, #tpu.memory_space<vmem>>, %arg7: memref<1x256xbf16, #tpu.memory_space<vmem>>, %arg8: memref<256x512xbf16, #tpu.memory_space<vmem>>, %arg9: memref<1x512xbf16, #tpu.memory_space<vmem>>, %arg10: memref<512x128xbf16, #tpu.memory_space<vmem>>, %arg11: memref<1x128xf32, #tpu.memory_space<vmem>>, %arg12: memref<16x128xf32, #tpu.memory_space<vmem>>) attributes {dimension_semantics = [#tpu.dimension_semantics<parallel>], iteration_bounds = array<i64: 1>, scalar_prefetch = 0 : i64, scratch_operands = 0 : i64, tpu.core_type = #tpu.core_type<tc>, window_params = [{transform_indices = @transform_0, window_bounds = array<i64: 16, 32>}, {pipeline_mode = #tpu.pipeline_mode<synchronous>, transform_indices = @transform_1, window_bounds = array<i64: 32, 128>}, {pipeline_mode = #tpu.pipeline_mode<synchronous>, transform_indices = @transform_2, window_bounds = array<i64: 1, 128>}, {pipeline_mode = #tpu.pipeline_mode<synchronous>, transform_indices = @transform_3, window_bounds = array<i64: 128, 128>}, {pipeline_mode = #tpu.pipeline_mode<synchronous>, transform_indices = @transform_4, window_bounds = array<i64: 1, 128>}, {pipeline_mode = #tpu.pipeline_mode<synchronous>, transform_indices = @transform_5, window_bounds = array<i64: 128, 256>}, {pipeline_mode = #tpu.pipeline_mode<synchronous>, transform_indices = @transform_6, window_bounds = array<i64: 1, 256>}, {pipeline_mode = #tpu.pipeline_mode<synchronous>, transform_indices = @transform_7, window_bounds = array<i64: 256, 512>}, {pipeline_mode = #tpu.pipeline_mode<synchronous>, transform_indices = @transform_8, window_bounds = array<i64: 1, 512>}, {pipeline_mode = #tpu.pipeline_mode<synchronous>, transform_indices = @transform_9, window_bounds = array<i64: 512, 128>}, {pipeline_mode = #tpu.pipeline_mode<synchronous>, transform_indices = @transform_10, window_bounds = array<i64: 1, 128>}, {transform_indices = @transform_11, window_bounds = array<i64: 16, 128>}]} {
    %c0 = arith.constant 0 : index
    %c0_0 = arith.constant 0 : index
    %0 = vector.load %arg1[%c0, %c0_0] : memref<16x32xbf16, #tpu.memory_space<vmem>>, vector<16x32xbf16>
    %c0_1 = arith.constant 0 : index
    %c0_2 = arith.constant 0 : index
    %1 = vector.load %arg2[%c0_1, %c0_2] : memref<32x128xbf16, #tpu.memory_space<vmem>>, vector<32x128xbf16>
    %cst = arith.constant dense<0.000000e+00> : vector<16x128xf32>
    %2 = tpu.matmul %0, %1, %cst {dimension_numbers = #tpu.dot_dimension_numbers<[1], [0], [0], [1], [0, 0, 1, 1], [], []>} : vector<16x32xbf16>, vector<32x128xbf16>, vector<16x128xf32> -> vector<16x128xf32>
    %c0_3 = arith.constant 0 : index
    %c0_4 = arith.constant 0 : index
    %3 = vector.load %arg3[%c0_3, %c0_4] : memref<1x128xbf16, #tpu.memory_space<vmem>>, vector<1x128xbf16>
    %4 = arith.truncf %2 : vector<16x128xf32> to vector<16x128xbf16>
    %5 = vector.broadcast %3 : vector<1x128xbf16> to vector<16x128xbf16>
    %6 = arith.addf %4, %5 : vector<16x128xbf16>
    %cst_5 = arith.constant 0.000000e+00 : bf16
    %7 = vector.broadcast %cst_5 : bf16 to vector<16x128xbf16>
    %8 = arith.maximumf %6, %7 : vector<16x128xbf16>
    %c0_6 = arith.constant 0 : index
    %c0_7 = arith.constant 0 : index
    %9 = vector.load %arg4[%c0_6, %c0_7] : memref<128x128xbf16, #tpu.memory_space<vmem>>, vector<128x128xbf16>
    %cst_8 = arith.constant dense<0.000000e+00> : vector<16x128xf32>
    %10 = tpu.matmul %8, %9, %cst_8 {dimension_numbers = #tpu.dot_dimension_numbers<[1], [0], [0], [1], [0, 0, 1, 1], [], []>} : vector<16x128xbf16>, vector<128x128xbf16>, vector<16x128xf32> -> vector<16x128xf32>
    %c0_9 = arith.constant 0 : index
    %c0_10 = arith.constant 0 : index
    %11 = vector.load %arg5[%c0_9, %c0_10] : memref<1x128xbf16, #tpu.memory_space<vmem>>, vector<1x128xbf16>
    %12 = arith.truncf %10 : vector<16x128xf32> to vector<16x128xbf16>
    %13 = vector.broadcast %11 : vector<1x128xbf16> to vector<16x128xbf16>
    %14 = arith.addf %12, %13 : vector<16x128xbf16>
    %cst_11 = arith.constant 0.000000e+00 : bf16
    %15 = vector.broadcast %cst_11 : bf16 to vector<16x128xbf16>
    %16 = arith.maximumf %14, %15 : vector<16x128xbf16>
    %c0_12 = arith.constant 0 : index
    %c0_13 = arith.constant 0 : index
    %17 = vector.load %arg6[%c0_12, %c0_13] : memref<128x256xbf16, #tpu.memory_space<vmem>>, vector<128x256xbf16>
    %cst_14 = arith.constant dense<0.000000e+00> : vector<16x256xf32>
    %18 = tpu.matmul %16, %17, %cst_14 {dimension_numbers = #tpu.dot_dimension_numbers<[1], [0], [0], [1], [0, 0, 1, 1], [], []>} : vector<16x128xbf16>, vector<128x256xbf16>, vector<16x256xf32> -> vector<16x256xf32>
    %c0_15 = arith.constant 0 : index
    %c0_16 = arith.constant 0 : index
    %19 = vector.load %arg7[%c0_15, %c0_16] : memref<1x256xbf16, #tpu.memory_space<vmem>>, vector<1x256xbf16>
    %20 = arith.truncf %18 : vector<16x256xf32> to vector<16x256xbf16>
    %21 = vector.broadcast %19 : vector<1x256xbf16> to vector<16x256xbf16>
    %22 = arith.addf %20, %21 : vector<16x256xbf16>
    %cst_17 = arith.constant 0.000000e+00 : bf16
    %23 = vector.broadcast %cst_17 : bf16 to vector<16x256xbf16>
    %24 = arith.maximumf %22, %23 : vector<16x256xbf16>
    %c0_18 = arith.constant 0 : index
    %c0_19 = arith.constant 0 : index
    %25 = vector.load %arg8[%c0_18, %c0_19] : memref<256x512xbf16, #tpu.memory_space<vmem>>, vector<256x512xbf16>
    %cst_20 = arith.constant dense<0.000000e+00> : vector<16x512xf32>
    %26 = tpu.matmul %24, %25, %cst_20 {dimension_numbers = #tpu.dot_dimension_numbers<[1], [0], [0], [1], [0, 0, 1, 1], [], []>} : vector<16x256xbf16>, vector<256x512xbf16>, vector<16x512xf32> -> vector<16x512xf32>
    %c0_21 = arith.constant 0 : index
    %c0_22 = arith.constant 0 : index
    %27 = vector.load %arg9[%c0_21, %c0_22] : memref<1x512xbf16, #tpu.memory_space<vmem>>, vector<1x512xbf16>
    %28 = arith.truncf %26 : vector<16x512xf32> to vector<16x512xbf16>
    %29 = vector.broadcast %27 : vector<1x512xbf16> to vector<16x512xbf16>
    %30 = arith.addf %28, %29 : vector<16x512xbf16>
    %cst_23 = arith.constant 0.000000e+00 : bf16
    %31 = vector.broadcast %cst_23 : bf16 to vector<16x512xbf16>
    %32 = arith.maximumf %30, %31 : vector<16x512xbf16>
    %c0_24 = arith.constant 0 : index
    %c0_25 = arith.constant 0 : index
    %33 = vector.load %arg10[%c0_24, %c0_25] : memref<512x128xbf16, #tpu.memory_space<vmem>>, vector<512x128xbf16>
    %cst_26 = arith.constant dense<0.000000e+00> : vector<16x128xf32>
    %34 = tpu.matmul %32, %33, %cst_26 {dimension_numbers = #tpu.dot_dimension_numbers<[1], [0], [0], [1], [0, 0, 1, 1], [], []>} : vector<16x512xbf16>, vector<512x128xbf16>, vector<16x128xf32> -> vector<16x128xf32>
    %c0_27 = arith.constant 0 : index
    %c0_28 = arith.constant 0 : index
    %35 = vector.load %arg11[%c0_27, %c0_28] : memref<1x128xf32, #tpu.memory_space<vmem>>, vector<1x128xf32>
    %36 = vector.broadcast %35 : vector<1x128xf32> to vector<16x128xf32>
    %37 = arith.addf %34, %36 : vector<16x128xf32>
    %c0_29 = arith.constant 0 : index
    %c0_30 = arith.constant 0 : index
    %38 = vector.load %arg12[%c0_29, %c0_30] : memref<16x128xf32, #tpu.memory_space<vmem>>, vector<16x128xf32>
    tpu.vector_store %arg12[%c0_29, %c0_30], %37 {strides = array<i32>} : memref<16x128xf32, #tpu.memory_space<vmem>>, vector<16x128xf32>,
    return
  }
  func.func @transform_0(%arg0: i32) -> (i32, i32) {
    %c0_i32 = arith.constant 0 : i32
    %c0_i32_0 = arith.constant 0 : i32
    return %arg0, %c0_i32 : i32, i32
  }
  func.func @transform_1(%arg0: i32) -> (i32, i32) {
    %c0_i32 = arith.constant 0 : i32
    %c0_i32_0 = arith.constant 0 : i32
    %c0_i32_1 = arith.constant 0 : i32
    return %c0_i32, %c0_i32_0 : i32, i32
  }
  func.func @transform_2(%arg0: i32) -> (i32, i32) {
    %c0_i32 = arith.constant 0 : i32
    %c0_i32_0 = arith.constant 0 : i32
    %c0_i32_1 = arith.constant 0 : i32
    return %c0_i32, %c0_i32_0 : i32, i32
  }
  func.func @transform_3(%arg0: i32) -> (i32, i32) {
    %c0_i32 = arith.constant 0 : i32
    %c0_i32_0 = arith.constant 0 : i32
    %c0_i32_1 = arith.constant 0 : i32
    return %c0_i32, %c0_i32_0 : i32, i32
  }
  func.func @transform_4(%arg0: i32) -> (i32, i32) {
    %c0_i32 = arith.constant 0 : i32
    %c0_i32_0 = arith.constant 0 : i32
    %c0_i32_1 = arith.constant 0 : i32
    return %c0_i32, %c0_i32_0 : i32, i32
  }
  func.func @transform_5(%arg0: i32) -> (i32, i32) {
    %c0_i32 = arith.constant 0 : i32
    %c0_i32_0 = arith.constant 0 : i32
    %c0_i32_1 = arith.constant 0 : i32
    return %c0_i32, %c0_i32_0 : i32, i32
  }
  func.func @transform_6(%arg0: i32) -> (i32, i32) {
    %c0_i32 = arith.constant 0 : i32
    %c0_i32_0 = arith.constant 0 : i32
    %c0_i32_1 = arith.constant 0 : i32
    return %c0_i32, %c0_i32_0 : i32, i32
  }
  func.func @transform_7(%arg0: i32) -> (i32, i32) {
    %c0_i32 = arith.constant 0 : i32
    %c0_i32_0 = arith.constant 0 : i32
    %c0_i32_1 = arith.constant 0 : i32
    return %c0_i32, %c0_i32_0 : i32, i32
  }
  func.func @transform_8(%arg0: i32) -> (i32, i32) {
    %c0_i32 = arith.constant 0 : i32
    %c0_i32_0 = arith.constant 0 : i32
    %c0_i32_1 = arith.constant 0 : i32
    return %c0_i32, %c0_i32_0 : i32, i32
  }
  func.func @transform_9(%arg0: i32) -> (i32, i32) {
    %c0_i32 = arith.constant 0 : i32
    %c0_i32_0 = arith.constant 0 : i32
    %c0_i32_1 = arith.constant 0 : i32
    return %c0_i32, %c0_i32_0 : i32, i32
  }
  func.func @transform_10(%arg0: i32) -> (i32, i32) {
    %c0_i32 = arith.constant 0 : i32
    %c0_i32_0 = arith.constant 0 : i32
    %c0_i32_1 = arith.constant 0 : i32
    return %c0_i32, %c0_i32_0 : i32, i32
  }
  func.func @transform_11(%arg0: i32) -> (i32, i32) {
    %c0_i32 = arith.constant 0 : i32
    %c0_i32_0 = arith.constant 0 : i32
    return %arg0, %c0_i32 : i32, i32
  }
}

</mosaic_0001>

<bundles_post_ra>
// kernel: tpu_custom_call.1
= control target key start
LH: loop header
LB: loop body
LE: loop exit
PB: predicated region body
PF: predicated region fallthrough
CT: control target
= control target key end

     0   :  { %16 = vsyncpa [#allocation3], 0  ;;  %s2335_s0 = inlined_call_operand.hbm [shape: bf16[16,32], index: 0, kind: input, shape index: {}]   ;;  %s2336_s1 = inlined_call_operand.hbm [shape: bf16[32,128], index: 1, kind: input, shape index: {}]   ;;  %s2337_s2 = inlined_call_operand.vmem [shape: bf16[1,128], index: 2, kind: input, shape index: {}]   ;;  %s2338_s3 = inlined_call_operand.hbm [shape: bf16[128,128], index: 3, kind: input, shape index: {}]   ;;  %s2339_s4 = inlined_call_operand.hbm [shape: bf16[1,128], index: 4, kind: input, shape index: {}]   ;;  %s2340_s5 = inlined_call_operand.hbm [shape: bf16[128,256], index: 5, kind: input, shape index: {}]   ;;  %s2341_s6 = inlined_call_operand.vmem [shape: bf16[1,256], index: 6, kind: input, shape index: {}]   ;;  %s2342_s7 = inlined_call_operand.hbm [shape: bf16[256,512], index: 7, kind: input, shape index: {}]   ;;  %s2343_s8 = inlined_call_operand.vmem [shape: bf16[1,512], index: 8, kind: input, shape index: {}]   ;;  %s2344_s9 = inlined_call_operand.hbm [shape: bf16[512,128], index: 9, kind: input, shape index: {}]   ;;  %s2345_s10 = inlined_call_operand.vmem [shape: f32[1,128], index: 10, kind: input, shape index: {}]   ;;  %s2346_s11 = inlined_call_operand.hbm [shape: f32[16,128], index: 11, kind: output, shape index: {}]  }
   0x1   :  { %17 = vsyncpa [#allocation6], 0 }
   0x2   :  { %18 = vsyncpa [#allocation9], 0 }
   0x3   :  { %19 = vsyncpa [#allocation12], 0 }
   0x4   :  { %20 = vsyncpa [#allocation4], 0  ;;  %s38_s19 = sshll.u32 %s2336_s1, 4  ;;  %s2199_s20 = smov [#allocation5]   ;;  %s39_s19 = int_to_ptr.hbm [resolvable:$true] %s38_s19 }
   0x5   :  { %s40_s21 = sshll.u32 %s2199_s20, 4  ;;  %s67_s24 = sshll.u32 %s2339_s4, 4  ;;  %s41_s21 = int_to_ptr.vmem [resolvable:$true] %s40_s21  ;;  %s68_s24 = int_to_ptr.hbm [resolvable:$true] %s67_s24 }
   0x6   :  { %s2200_s25 = smov 64   ;;  %s2201_s26 = smov 4  }
   0x7   :  { %46 = dma.hbm_to_vmem [thread:$0]  %s39_s19, 256, %s41_s21, [#allocation6], %s2200_s25, %s2200_s25, %s2201_s26  }
   0x8   :  { %s2202_s27 = smov [#allocation8]   ;;  %s92_s1 = sshll.u32 %s2342_s7, 4  ;;  %s93_s1 = int_to_ptr.hbm [resolvable:$true] %s92_s1 }
   0x9   :  { %s69_s28 = sshll.u32 %s2202_s27, 4  ;;  %s2203_s12 = smov [#allocation11]   ;;  %s70_s28 = int_to_ptr.vmem [resolvable:$true] %s69_s28 }
   0xa   :  { %72 = dma.hbm_to_vmem [thread:$0]  %s68_s24, 16, %s70_s28, [#allocation9]  }
   0xb   :  { %s94_s13 = sshll.u32 %s2203_s12, 4  ;;  %s25_s15 = sshll.u32 %s2335_s0, 4  ;;  %s95_s13 = int_to_ptr.vmem [resolvable:$true] %s94_s13  ;;  %s26_s15 = int_to_ptr.hbm [resolvable:$true] %s25_s15 }
   0xc   :  { %s2204_s16 = smov 256   ;;  %s2205_s17 = smov 16  }
   0xd   :  { %100 = dma.hbm_to_vmem [thread:$0]  %s93_s1, 8192, %s95_s13, [#allocation12], %s2204_s16, %s2204_s16, %s2205_s17  }
   0xe   :  { %s2206_s18 = smov [#allocation2]   ;;  %s53_s7 = sshll.u32 %s2338_s3, 4  ;;  %s54_s7 = int_to_ptr.hbm [resolvable:$true] %s53_s7 }
   0xf   :  { %s27_s19 = sshll.u32 %s2206_s18, 4  ;;  %s77_s0 = sshll.u32 %s2340_s5, 4  ;;  %s28_s19 = int_to_ptr.vmem [resolvable:$true] %s27_s19  ;;  %s78_s0 = int_to_ptr.hbm [resolvable:$true] %s77_s0 }
  0x10   :  { %33 = dma.hbm_to_vmem [thread:$0]  %s26_s15, 128, %s28_s19, [#allocation3], %s2200_s25, %s2200_s25, %s2201_s26  }
  0x11   :  { %s2207_s24 = smov [#allocation7]   ;;  %s2208_s28 = smov [#allocation10]  }
  0x12   :  { %s55_s27 = sshll.u32 %s2207_s24, 4  ;;  %s79_s3 = sshll.u32 %s2208_s28, 4  ;;  %s56_s27 = int_to_ptr.vmem [resolvable:$true] %s55_s27  ;;  %s80_s3 = int_to_ptr.vmem [resolvable:$true] %s79_s3 }
  0x13   :  { %61 = dma.hbm_to_vmem [thread:$0]  %s54_s7, 1024, %s56_s27, [#allocation6], %s2200_s25, %s2200_s25, %s2201_s26  }
  0x14   :  { %s2209_s29 = smov 128   ;;  %s2210_s30 = smov 8  }
  0x15   :  { %85 = dma.hbm_to_vmem [thread:$0]  %s78_s0, 2048, %s80_s3, [#allocation9], %s2209_s29, %s2209_s29, %s2210_s30  }
  0x16   :  { %s107_s5 = sshll.u32 %s2344_s9, 4  ;;  %s2211_s13 = smov [#allocation13]   ;;  %s108_s5 = int_to_ptr.hbm [resolvable:$true] %s107_s5 }
  0x17   :  { %s109_s4 = sshll.u32 %s2211_s13, 4  ;;  %s110_s4 = int_to_ptr.vmem [resolvable:$true] %s109_s4 }
  0x18   :  { %115 = dma.hbm_to_vmem [thread:$0]  %s108_s5, 4096, %s110_s4, [#allocation12], %s2200_s25, %s2200_s25, %s2201_s26  }
  0x19   :  { %2189 = dma.done.wait [#allocation3], 128  }
  0x1a   :  { %2190 = vsyncadd [#allocation3], 4294967168 }
  0x1b   :  { %2191 = dma.done.wait [#allocation6], 1280  }
  0x1c   :  { %2192 = vsyncadd [#allocation6], 4294966016 }
  0x1d   :  { %2193 = dma.done.wait [#allocation9], 2064  }
  0x1e   :  { %2194 = vsyncadd [#allocation9], 4294965232 }
  0x1f   :  { %2195 = dma.done.wait [#allocation12], 12288  }
  0x20   :  { %2196 = vsyncadd [#allocation12], 4294955008  ;;  %v1861_v0 = vld [vmem:[#allocation5 + $0x8] sm:$0xff]  ;;  %v1860_v2 = vld [vmem:[#allocation5] sm:$0xff]  ;;  %vm170_vm0 = vcmask 261120   ;;  %s2212_s16 = smov [#allocation14]  }
  0x21   :  { %v1869_v1 = vld [vmem:[#allocation7 + $0x38] sm:$0xff]  ;;  %180 = vmatpush.bf16.msra.mxu0 %v1861_v0  ;;  %v1868_v3 = vld [vmem:[#allocation7 + $0x30] sm:$0xff]  ;;  %v1859_v4 = vld [vmem:[#allocation2] sm:$0xff]  ;;  %s1348_s17 = sshll.u32 %s2212_s16, 4  ;;  %s1350_s20 = sshll.u32 %s2346_s11, 4  ;;  %s1349_s17 = int_to_ptr.vmem [resolvable:$true] %s1348_s17  ;;  %s1351_s20 = int_to_ptr.hbm [resolvable:$true] %s1350_s20 }
  0x22   :  { %271 = vmatpush.bf16.msra.mxu1 %v1869_v1  ;;  %v1867_v5 = vld [vmem:[#allocation7 + $0x28] sm:$0xff]  ;;  %v1866_v6 = vld [vmem:[#allocation7 + $0x20] sm:$0xff]  ;;  %v1865_v7 = vld [vmem:[#allocation7 + $0x18] sm:$0xff] }
  0x23   :  { %v1864_v8 = vld [vmem:[#allocation7 + $0x10] sm:$0xff]  ;;  %v1863_v9 = vld [vmem:[#allocation7 + $0x8] sm:$0xff]  ;;  %v1862_v10 = vld [vmem:[#allocation7] sm:$0xff] }
  0x24   :  { %v1469_v11 = vld [vmem:[#allocation10 + $0x70] sm:$0xf]  ;;  %v1885_v12 = vld [vmem:[#allocation10 + $0x74] sm:$0xf0]  ;;  %v1884_v13 = vld [vmem:[#allocation10 + $0x74] sm:$0xf] }
  0x25   :  { %181 = vmatpush.bf16.msra.mxu0 %v1860_v2  ;;  %v1470_v14 = vor.u32 %v1885_v12, %v1469_v11  ;;  %v1471_v15 = vld [vmem:[#allocation10 + $0x78] sm:$0xf0]  ;;  %v1461_v16 = vld [vmem:[#allocation10 + $0x60] sm:$0xf]  ;;  %v1883_v17 = vld [vmem:[#allocation10 + $0x64] sm:$0xf0] }
  0x26   :  { %272 = vmatpush.bf16.msra.mxu1 %v1868_v3  ;;  %v1474_v18 = vor.u32 %v1884_v13, %v1471_v15  ;;  %v1882_v19 = vld [vmem:[#allocation10 + $0x64] sm:$0xf]  ;;  %v1463_v20 = vld [vmem:[#allocation10 + $0x68] sm:$0xf0]  ;;  %v1462_v21 = vor.u32 %v1883_v17, %v1461_v16  ;;  %v1453_v23 = vld [vmem:[#allocation10 + $0x50] sm:$0xf] }
  0x27   :  { %400 = vmatpush.bf16.msra.mxu2 %v1470_v14  ;;  %v1466_v22 = vor.u32 %v1882_v19, %v1463_v20  ;;  %v1881_v24 = vld [vmem:[#allocation10 + $0x54] sm:$0xf0]  ;;  %v1880_v25 = vld [vmem:[#allocation10 + $0x54] sm:$0xf]  ;;  %v1455_v26 = vld [vmem:[#allocation10 + $0x58] sm:$0xf0] }
  0x28   :  { %1378 = vmatmul.msk.bf16.vlgmr.msra.gmra.mxu0 %vm170_vm0, %v1859_v4  ;;  %414 = vmatpush.bf16.msra.mxu3 %v1474_v18  ;;  %v1454_v27 = vor.u32 %v1881_v24, %v1453_v23  ;;  %v1458_v28 = vor.u32 %v1880_v25, %v1455_v26  ;;  %v188_v29 = vld [vmem:[%s2337_s2] sm:$0x1]  ;;  %v1445_v44 = vld [vmem:[#allocation10 + $0x40] sm:$0xf]  ;;  %v1879_v45 = vld [vmem:[#allocation10 + $0x44] sm:$0xf0] }
  0x29   :  { %v192_v30 = vpack.i.b16 %v188_v29, %v188_v29  ;;  %v1878_v46 = vld [vmem:[#allocation10 + $0x44] sm:$0xf]  ;;  %v1446_v47 = vor.u32 %v1879_v45, %v1445_v44  ;;  %v1447_v48 = vld [vmem:[#allocation10 + $0x48] sm:$0xf0]  ;;  %v1437_v50 = vld [vmem:[#allocation10 + $0x30] sm:$0xf] }
  0x2a   :  { %273 = vmatpush.bf16.msra.mxu1 %v1867_v5  ;;  %v1450_v49 = vor.u32 %v1878_v46, %v1447_v48  ;;  %v1877_v51 = vld [vmem:[#allocation10 + $0x34] sm:$0xf0]  ;;  %v1876_v53 = vld [vmem:[#allocation10 + $0x34] sm:$0xf]  ;;  %v1439_v54 = vld [vmem:[#allocation10 + $0x38] sm:$0xf0] }
  0x2b   :  { %401 = vmatpush.bf16.msra.mxu2 %v1462_v21  ;;  %v194_v33 = vperm.slane %v192_v30, 0  ;;  %v1438_v52 = vor.u32 %v1877_v51, %v1437_v50  ;;  %v1442_v55 = vor.u32 %v1876_v53, %v1439_v54  ;;  %v1429_v56 = vld [vmem:[#allocation10 + $0x20] sm:$0xf]  ;;  %v1875_v57 = vld [vmem:[#allocation10 + $0x24] sm:$0xf0] }
  0x2c   :  { %415 = vmatpush.bf16.msra.mxu3 %v1466_v22  ;;  %v1874_v58 = vld [vmem:[#allocation10 + $0x24] sm:$0xf]  ;;  %v1430_v59 = vor.u32 %v1875_v57, %v1429_v56  ;;  %v1431_v60 = vld [vmem:[#allocation10 + $0x28] sm:$0xf0]  ;;  %v1421_v62 = vld [vmem:[#allocation10 + $0x10] sm:$0xf] }
  0x2d   :  { %v197_v35 = vunpack.c.l.bf16 %v194_v33  ;;  %v1434_v61 = vor.u32 %v1874_v58, %v1431_v60  ;;  %v1873_v63 = vld [vmem:[#allocation10 + $0x14] sm:$0xf0]  ;;  %v1872_v0 = vld [vmem:[#allocation10 + $0x14] sm:$0xf]  ;;  %v1423_v2 = vld [vmem:[#allocation10 + $0x18] sm:$0xf0] }
  0x2e   :  { %274 = vmatpush.bf16.msra.mxu1 %v1866_v6  ;;  %v1422_v1 = vor.u32 %v1873_v63, %v1421_v62  ;;  %v1426_v3 = vor.u32 %v1872_v0, %v1423_v2  ;;  %v1413_v4 = vld [vmem:[#allocation10] sm:$0xf]  ;;  %v1871_v5 = vld [vmem:[#allocation10 + $0x4] sm:$0xf0]  ;;  %v1870_v6 = vld [vmem:[#allocation10 + $0x4] sm:$0xf] }
  0x2f   :  { %402 = vmatpush.bf16.msra.mxu2 %v1454_v27  ;;  %v1916_v11 = vld [vmem:[#allocation11 + $0xec] sm:$0xf0]  ;;  %v1717_v12 = vld [vmem:[#allocation11 + $0x1e0] sm:$0xf]  ;;  %v1914_v15 = vld [vmem:[#allocation11 + $0xe4] sm:$0xf] }
  0x30   :  { %416 = vmatpush.bf16.msra.mxu3 %v1458_v28  ;;  %v1948_v14 = vld [vmem:[#allocation11 + $0x1ec] sm:$0xf0]  ;;  %v1591_v16 = vld [vmem:[#allocation11 + $0xf0] sm:$0xf0]  ;;  %v1946_v19 = vld [vmem:[#allocation11 + $0x1e4] sm:$0xf] }
  0x31   :  { %v1718_v17 = vor.u32 %v1948_v14, %v1717_v12  ;;  %v1594_v18 = vor.u32 %v1914_v15, %v1591_v16  ;;  %v1719_v20 = vld [vmem:[#allocation11 + $0x1f0] sm:$0xf0]  ;;  %v1573_v21 = vld [vmem:[#allocation11 + $0xc0] sm:$0xf]  ;;  %v1912_v23 = vld [vmem:[#allocation11 + $0xcc] sm:$0xf0] }
  0x32   :  { %275 = vmatpush.bf16.msra.mxu1 %v1865_v7  ;;  %v1414_v7 = vor.u32 %v1871_v5, %v1413_v4  ;;  %v1722_v22 = vor.u32 %v1946_v19, %v1719_v20  ;;  %v1701_v24 = vld [vmem:[#allocation11 + $0x1c0] sm:$0xf]  ;;  %v1944_v25 = vld [vmem:[#allocation11 + $0x1cc] sm:$0xf0]  ;;  %v1574_v26 = vor.u32 %v1912_v23, %v1573_v21  ;;  %v1910_v28 = vld [vmem:[#allocation11 + $0xc4] sm:$0xf] }
  0x33   :  { %403 = vmatpush.bf16.msra.mxu2 %v1446_v47  ;;  %v1702_v27 = vor.u32 %v1944_v25, %v1701_v24  ;;  %v1575_v29 = vld [vmem:[#allocation11 + $0xd0] sm:$0xf0]  ;;  %v1942_v30 = vld [vmem:[#allocation11 + $0x1c4] sm:$0xf]  ;;  %v1557_v33 = vld [vmem:[#allocation11 + $0xa0] sm:$0xf] }
  0x34   :  { %417 = vmatpush.bf16.msra.mxu3 %v1450_v49  ;;  %v1541_v46 = vld [vmem:[#allocation11 + $0x80] sm:$0xf]  ;;  %v1904_v47 = vld [vmem:[#allocation11 + $0x8c] sm:$0xf0]  ;;  %v1902_v51 = vld [vmem:[#allocation11 + $0x84] sm:$0xf] }
  0x35   :  { %v1669_v48 = vld [vmem:[#allocation11 + $0x180] sm:$0xf]  ;;  %v1936_v50 = vld [vmem:[#allocation11 + $0x18c] sm:$0xf0]  ;;  %v1934_v53 = vld [vmem:[#allocation11 + $0x184] sm:$0xf]  ;;  %v1542_v56 = vor.u32 %v1904_v47, %v1541_v46 }
  0x36   :  { %276 = vmatpush.bf16.msra.mxu1 %v1864_v8  ;;  %v1415_v8 = vld [vmem:[#allocation10 + $0x8] sm:$0xf0]  ;;  %v1671_v54 = vld [vmem:[#allocation11 + $0x190] sm:$0xf0]  ;;  %v1670_v57 = vor.u32 %v1936_v50, %v1669_v48  ;;  %v1900_v60 = vld [vmem:[#allocation11 + $0x6c] sm:$0xf0] }
  0x37   :  { %404 = vmatpush.bf16.msra.mxu2 %v1438_v52  ;;  %v1543_v52 = vld [vmem:[#allocation11 + $0x90] sm:$0xf0]  ;;  %v1674_v63 = vor.u32 %v1934_v53, %v1671_v54  ;;  %v1932_v0 = vld [vmem:[#allocation11 + $0x16c] sm:$0xf0]  ;;  %v1637_v12 = vld [vmem:[#allocation11 + $0x140] sm:$0xf] }
  0x38   :  { %418 = vmatpush.bf16.msra.mxu3 %v1442_v55  ;;  %v1546_v58 = vor.u32 %v1902_v51, %v1543_v52  ;;  %v1527_v2 = vld [vmem:[#allocation11 + $0x70] sm:$0xf0]  ;;  %v1928_v14 = vld [vmem:[#allocation11 + $0x14c] sm:$0xf0]  ;;  %v1894_v15 = vld [vmem:[#allocation11 + $0x44] sm:$0xf] }
  0x39   :  { %v1655_v4 = vld [vmem:[#allocation11 + $0x170] sm:$0xf0]  ;;  %v1493_v24 = vld [vmem:[#allocation11 + $0x20] sm:$0xf]  ;;  %v1892_v25 = vld [vmem:[#allocation11 + $0x2c] sm:$0xf0] }
  0x3a   :  { %277 = vmatpush.bf16.msra.mxu1 %v1863_v9  ;;  %v1418_v9 = vor.u32 %v1870_v6, %v1415_v8  ;;  %v1511_v16 = vld [vmem:[#allocation11 + $0x50] sm:$0xf0]  ;;  %v1477_v46 = vld [vmem:[#allocation11] sm:$0xf]  ;;  %v1888_v47 = vld [vmem:[#allocation11 + $0xc] sm:$0xf0] }
  0x3b   :  { %405 = vmatpush.bf16.msra.mxu2 %v1430_v59  ;;  %v1525_v59 = vld [vmem:[#allocation11 + $0x60] sm:$0xf]  ;;  %v1514_v23 = vor.u32 %v1894_v15, %v1511_v16  ;;  %v1920_v50 = vld [vmem:[#allocation11 + $0x10c] sm:$0xf0]  ;;  %v1886_v51 = vld [vmem:[#allocation11 + $0x4] sm:$0xf] }
  0x3c   :  { %419 = vmatpush.bf16.msra.mxu3 %v1434_v61  ;;  %v1653_v61 = vld [vmem:[#allocation11 + $0x160] sm:$0xf]  ;;  %v1526_v6 = vor.u32 %v1900_v60, %v1525_v59  ;;  %v1479_v53 = vld [vmem:[#allocation11 + $0x10] sm:$0xf0]  ;;  %v1918_v54 = vld [vmem:[#allocation11 + $0x104] sm:$0xf] }
  0x3d   :  { %v1654_v8 = vor.u32 %v1932_v0, %v1653_v61  ;;  %v1605_v48 = vld [vmem:[#allocation11 + $0x100] sm:$0xf]  ;;  %v1917_v59 = vld [vmem:[#allocation11 + $0xf4] sm:$0xf0]  ;;  %v1725_v60 = vld [vmem:[#allocation11 + $0x1e8] sm:$0xf] }
  0x3e   :  { %278 = vmatpush.bf16.msra.mxu1 %v1862_v10  ;;  %v1589_v10 = vld [vmem:[#allocation11 + $0xe0] sm:$0xf]  ;;  %v1606_v52 = vor.u32 %v1920_v50, %v1605_v48  ;;  %v1599_v0 = vld [vmem:[#allocation11 + $0xf8] sm:$0xf0]  ;;  %v1911_v15 = vld [vmem:[#allocation11 + $0xcc] sm:$0xf] }
  0x3f   :  { %406 = vmatpush.bf16.msra.mxu2 %v1422_v1  ;;  %v1590_v13 = vor.u32 %v1916_v11, %v1589_v10  ;;  %v1898_v1 = vld [vmem:[#allocation11 + $0x64] sm:$0xf]  ;;  %v1509_v10 = vld [vmem:[#allocation11 + $0x40] sm:$0xf]  ;;  %v1896_v11 = vld [vmem:[#allocation11 + $0x4c] sm:$0xf0] }
  0x40   :  { %420 = vmatpush.bf16.msra.mxu3 %v1426_v3  ;;  %v1930_v3 = vld [vmem:[#allocation11 + $0x164] sm:$0xf]  ;;  %v1510_v19 = vor.u32 %v1896_v11, %v1509_v10  ;;  %v1709_v10 = vld [vmem:[#allocation11 + $0x1c8] sm:$0xf]  ;;  %v1945_v11 = vld [vmem:[#allocation11 + $0x1d4] sm:$0xf0] }
  0x41   :  { %847 = vmatpush.bf16.msrb.mxu0 %v1590_v13  ;;  %v1658_v13 = vor.u32 %v1930_v3, %v1655_v4  ;;  %v1583_v16 = vld [vmem:[#allocation11 + $0xd8] sm:$0xf0]  ;;  %v1899_v50 = vld [vmem:[#allocation11 + $0x6c] sm:$0xf] }
  0x42   :  { %861 = vmatpush.bf16.msrb.mxu1 %v1718_v17  ;;  %v1926_v17 = vld [vmem:[#allocation11 + $0x144] sm:$0xf] }
  0x43   :  { %407 = vmatpush.bf16.msra.mxu2 %v1414_v7 }
  0x44   :  { %421 = vmatpush.bf16.msra.mxu3 %v1418_v9  ;;  %v1530_v9 = vor.u32 %v1898_v1, %v1527_v2 }
  0x45   :  { %848 = vmatpush.bf16.msrb.mxu0 %v1574_v26  ;;  %v1621_v26 = vld [vmem:[#allocation11 + $0x120] sm:$0xf] }
  0x46   :  { %862 = vmatpush.bf16.msrb.mxu1 %v1702_v27 }
  0x47   :  { %875 = vmatpush.bf16.msrb.mxu2 %v1594_v18  ;;  %v1639_v18 = vld [vmem:[#allocation11 + $0x150] sm:$0xf0] }
  0x48   :  { %889 = vmatpush.bf16.msrb.mxu3 %v1722_v22  ;;  %v1638_v22 = vor.u32 %v1928_v14, %v1637_v12  ;;  %v959_v12 = vld [vmem:[%s2343_s8] sm:$0xf]  ;;  %v1710_v14 = vor.u32 %v1945_v11, %v1709_v10  ;;  %v1925_v10 = vld [vmem:[#allocation11 + $0x134] sm:$0xf0]  ;;  %v1891_v11 = vld [vmem:[#allocation11 + $0x2c] sm:$0xf] }
  0xa5   :  { %v183_v31 = vpop.f32.mrf.mxu0 }
  0xa6   :  { %v189_v32 = vpack.c.bf16 %v183_v31, %v183_v31  ;;  %v1578_v31 = vor.u32 %v1910_v28, %v1575_v29  ;;  %v1642_v28 = vor.u32 %v1926_v17, %v1639_v18  ;;  %v1924_v29 = vld [vmem:[#allocation11 + $0x12c] sm:$0xf0]  ;;  %v1586_v17 = vor.u32 %v1911_v15, %v1583_v16  ;;  %v1943_v18 = vld [vmem:[#allocation11 + $0x1cc] sm:$0xf] }
  0xa8   :  { %v195_v34 = vunpack.c.l.bf16 %v189_v32  ;;  %v1703_v32 = vld [vmem:[#allocation11 + $0x1d0] sm:$0xf0]  ;;  %876 = vmatpush.bf16.msrb.mxu2 %v1578_v31 }
  0xa9   :  { %v1495_v31 = vld [vmem:[#allocation11 + $0x30] sm:$0xf0] }
  0xaa   :  { %v198_v38 = vadd.f32 %v197_v35, %v195_v34  ;;  %v1908_v34 = vld [vmem:[#allocation11 + $0xac] sm:$0xf0] }
  0xac   :  { %v204_v41 = vmax.f32 %v198_v38, 0.0  ;;  %v1940_v38 = vld [vmem:[#allocation11 + $0x1ac] sm:$0xf0] }
  0xad   :  { %v185_v36 = vpop.f32.mrf.mxu0 }
  0xae   :  { %v190_v37 = vpack.c.bf16 %v185_v36, %v185_v36  ;;  %v1706_v36 = vor.u32 %v1942_v30, %v1703_v32  ;;  %v1890_v30 = vld [vmem:[#allocation11 + $0x24] sm:$0xf] }
  0xb0   :  { %v196_v39 = vunpack.c.l.bf16 %v190_v37  ;;  %v1685_v37 = vld [vmem:[#allocation11 + $0x1a0] sm:$0xf]  ;;  %890 = vmatpush.bf16.msrb.mxu3 %v1706_v36 }
  0xb1   :  { %v1686_v44 = vor.u32 %v1940_v38, %v1685_v37  ;;  %v1622_v38 = vor.u32 %v1924_v29, %v1621_v26  ;;  %v1907_v26 = vld [vmem:[#allocation11 + $0xac] sm:$0xf] }
  0xb2   :  { %v199_v40 = vadd.f32 %v197_v35, %v196_v39  ;;  %v285_v35 = vld [vmem:[#allocation8] sm:$0x1]  ;;  %v1906_v39 = vld [vmem:[#allocation11 + $0xa4] sm:$0xf] }
  0xb3   :  { %v289_v55 = vpack.i.b16 %v285_v35, %v285_v35  ;;  %863 = vmatpush.bf16.msrb.mxu1 %v1686_v44  ;;  %v1494_v35 = vor.u32 %v1892_v25, %v1493_v24  ;;  %v1941_v25 = vld [vmem:[#allocation11 + $0x1b4] sm:$0xf0] }
  0xb4   :  { %v205_v42 = vmax.f32 %v199_v40, 0.0  ;;  %v1558_v40 = vor.u32 %v1908_v34, %v1557_v33  ;;  %v1922_v33 = vld [vmem:[#allocation11 + $0x124] sm:$0xf]  ;;  %v1623_v34 = vld [vmem:[#allocation11 + $0x130] sm:$0xf0] }
  0xb5   :  { %v291_v5 = vperm.slane %v289_v55, 0  ;;  %v1607_v55 = vld [vmem:[#allocation11 + $0x110] sm:$0xf0] }
  0xb6   :  { %v206_v43 = vpack.c.bf16 %v205_v42, %v204_v41  ;;  %v1559_v41 = vld [vmem:[#allocation11 + $0xb0] sm:$0xf0]  ;;  %v1938_v42 = vld [vmem:[#allocation11 + $0x1a4] sm:$0xf]  ;;  %849 = vmatpush.bf16.msrb.mxu0 %v1558_v40  ;;  %v1626_v40 = vor.u32 %v1922_v33, %v1623_v34  ;;  %v1549_v33 = vld [vmem:[#allocation11 + $0x88] sm:$0xf] }
  0xb7   :  { %v1562_v45 = vor.u32 %v1906_v39, %v1559_v41  ;;  %864 = vmatpush.bf16.msrb.mxu1 %v1670_v57  ;;  %v294_v21 = vunpack.c.l.bf16 %v291_v5  ;;  %v1498_v39 = vor.u32 %v1890_v30, %v1495_v31  ;;  %v1610_v57 = vor.u32 %v1918_v54, %v1607_v55  ;;  %v1947_v5 = vld [vmem:[#allocation11 + $0x1ec] sm:$0xf]  ;;  %v1695_v31 = vld [vmem:[#allocation11 + $0x1b8] sm:$0xf0]  ;;  %v1905_v34 = vld [vmem:[#allocation11 + $0x94] sm:$0xf0] }
  0xb8   :  { %279 = vmatmul.bf16.vlgmr.msra.gmra.mxu1 %v206_v43  ;;  %v1687_v43 = vld [vmem:[#allocation11 + $0x1b0] sm:$0xf0]  ;;  %v1939_v30 = vld [vmem:[#allocation11 + $0x1ac] sm:$0xf]  ;;  %v1663_v55 = vld [vmem:[#allocation11 + $0x178] sm:$0xf0] }
  0xb9   :  { %v1690_v49 = vor.u32 %v1938_v42, %v1687_v43  ;;  %877 = vmatpush.bf16.msrb.mxu2 %v1562_v45  ;;  %v428_v45 = vld [vmem:[%s2341_s6] sm:$0x3]  ;;  %v1931_v54 = vld [vmem:[#allocation11 + $0x16c] sm:$0xf] }
  0xba   :  { %850 = vmatpush.bf16.msrb.mxu0 %v1542_v56  ;;  %432 = vst [vmem:[#allocation1] ss:$9 sm:$0xff] %v428_v45  ;;  %v1482_v56 = vor.u32 %v1886_v51, %v1479_v53  ;;  %v1533_v45 = vld [vmem:[#allocation11 + $0x68] sm:$0xf]  ;;  %v1535_v51 = vld [vmem:[#allocation11 + $0x78] sm:$0xf0] }
  0xbb   :  { %891 = vmatpush.bf16.msrb.mxu3 %v1690_v49  ;;  %865 = vmatpush.bf16.msrb.mxu1 %v1654_v8  ;;  %v1478_v49 = vor.u32 %v1888_v47, %v1477_v46  ;;  %v1901_v46 = vld [vmem:[#allocation11 + $0x74] sm:$0xf0]  ;;  %v1661_v47 = vld [vmem:[#allocation11 + $0x168] sm:$0xf]  ;;  %v1538_v53 = vor.u32 %v1899_v50, %v1535_v51 }
  0xbc   :  { %v1534_v48 = vor.u32 %v1901_v46, %v1533_v45 }
  0xbd   :  { %878 = vmatpush.bf16.msrb.mxu2 %v1546_v58  ;;  %v1597_v58 = vld [vmem:[#allocation11 + $0xe8] sm:$0xf] }
  0xbe   :  { %851 = vmatpush.bf16.msrb.mxu0 %v1526_v6  ;;  %v1598_v61 = vor.u32 %v1917_v59, %v1597_v58  ;;  %v1727_v6 = vld [vmem:[#allocation11 + $0x1f8] sm:$0xf0]  ;;  %v1897_v58 = vld [vmem:[#allocation11 + $0x54] sm:$0xf0]  ;;  %v1645_v59 = vld [vmem:[#allocation11 + $0x148] sm:$0xf] }
  0xbf   :  { %892 = vmatpush.bf16.msrb.mxu3 %v1674_v63  ;;  %866 = vmatpush.bf16.msrb.mxu1 %v1638_v22  ;;  %v1915_v63 = vld [vmem:[#allocation11 + $0xec] sm:$0xf]  ;;  %v1730_v8 = vor.u32 %v1947_v5, %v1727_v6  ;;  %v1909_v22 = vld [vmem:[#allocation11 + $0xb4] sm:$0xf0]  ;;  %v1647_v5 = vld [vmem:[#allocation11 + $0x158] sm:$0xf0] }
  0xc0   :  { %v1602_v4 = vor.u32 %v1915_v63, %v1599_v0  ;;  %v1519_v63 = vld [vmem:[#allocation11 + $0x58] sm:$0xf0]  ;;  %v1927_v0 = vld [vmem:[#allocation11 + $0x14c] sm:$0xf]  ;;  %v1501_v6 = vld [vmem:[#allocation11 + $0x28] sm:$0xf] }
  0xc1   :  { %879 = vmatpush.bf16.msrb.mxu2 %v1530_v9  ;;  %v2315_v1 = vld [vmem:[#allocation1] sm:$0xff]  ;;  %v2317_v2 = vld [vmem:[#allocation1 + $0x9] sm:$0xff]  ;;  %v1913_v9 = vld [vmem:[#allocation11 + $0xd4] sm:$0xf0] }
  0xc2   :  { %852 = vmatpush.bf16.msrb.mxu0 %v1510_v19  ;;  %965 = vst [vmem:[#allocation1] ss:$9 sm:$0xff] %v959_v12  ;;  %v1711_v19 = vld [vmem:[#allocation11 + $0x1d8] sm:$0xf0] }
  0xc3   :  { %893 = vmatpush.bf16.msrb.mxu3 %v1658_v13  ;;  %867 = vmatpush.bf16.msrb.mxu1 %v1622_v38  ;;  %v1903_v38 = vld [vmem:[#allocation11 + $0x8c] sm:$0xf]  ;;  %v1503_v12 = vld [vmem:[#allocation11 + $0x38] sm:$0xf0] }
  0xc5   :  { %880 = vmatpush.bf16.msrb.mxu2 %v1514_v23  ;;  %v1693_v23 = vld [vmem:[#allocation11 + $0x1a8] sm:$0xf] }
  0xc6   :  { %853 = vmatpush.bf16.msrb.mxu0 %v1494_v35  ;;  %v1677_v35 = vld [vmem:[#allocation11 + $0x188] sm:$0xf] }
  0xc7   :  { %894 = vmatpush.bf16.msrb.mxu3 %v1642_v28  ;;  %868 = vmatpush.bf16.msrb.mxu1 %v1606_v52  ;;  %v1694_v28 = vor.u32 %v1941_v25, %v1693_v23  ;;  %v1887_v23 = vld [vmem:[#allocation11 + $0xc] sm:$0xf] }
  0xc8   :  { %v1919_v25 = vld [vmem:[#allocation11 + $0x10c] sm:$0xf] }
  0xc9   :  { %881 = vmatpush.bf16.msrb.mxu2 %v1498_v39  ;;  %v1551_v39 = vld [vmem:[#allocation11 + $0x98] sm:$0xf0] }
  0xca   :  { %854 = vmatpush.bf16.msrb.mxu0 %v1478_v49  ;;  %v1933_v49 = vld [vmem:[#allocation11 + $0x174] sm:$0xf0] }
  0xcb   :  { %895 = vmatpush.bf16.msrb.mxu3 %v1626_v40  ;;  %v1662_v52 = vor.u32 %v1933_v49, %v1661_v47 }
  0xcd   :  { %882 = vmatpush.bf16.msrb.mxu2 %v1482_v56  ;;  %v1517_v56 = vld [vmem:[#allocation11 + $0x48] sm:$0xf] }
  0xce   :  { %903 = vmatpush.bf16.msra.mxu0 %v1598_v61  ;;  %v1518_v61 = vor.u32 %v1897_v58, %v1517_v56  ;;  %v1965_v56 = vld [vmem:[#allocation13 + $0x78] sm:$0xff]  ;;  %v1964_v58 = vld [vmem:[#allocation13 + $0x70] sm:$0xff] }
  0xcf   :  { %896 = vmatpush.bf16.msrb.mxu3 %v1610_v57  ;;  %v1666_v57 = vor.u32 %v1931_v54, %v1663_v55  ;;  %v1957_v55 = vld [vmem:[#allocation13 + $0x38] sm:$0xff] }
 0x135   :  { %v280_v62 = vpop.f32.mrf.mxu1 }
 0x136   :  { %v286_v7 = vpack.c.bf16 %v280_v62, %v280_v62  ;;  %v1949_v62 = vld [vmem:[#allocation11 + $0x1f4] sm:$0xf0] }
 0x137   :  { %v1726_v3 = vor.u32 %v1949_v62, %v1725_v60  ;;  %v1929_v60 = vld [vmem:[#allocation11 + $0x154] sm:$0xf0]  ;;  %v1895_v62 = vld [vmem:[#allocation11 + $0x4c] sm:$0xf] }
 0x138   :  { %v292_v20 = vunpack.c.l.bf16 %v286_v7  ;;  %v1581_v7 = vld [vmem:[#allocation11 + $0xc8] sm:$0xf] }
 0x139   :  { %917 = vmatpush.bf16.msra.mxu1 %v1726_v3  ;;  %v1582_v13 = vor.u32 %v1913_v9, %v1581_v7  ;;  %v1646_v3 = vor.u32 %v1929_v60, %v1645_v59  ;;  %v1893_v7 = vld [vmem:[#allocation11 + $0x34] sm:$0xf0]  ;;  %v1629_v9 = vld [vmem:[#allocation11 + $0x128] sm:$0xf] }
 0x13a   :  { %v295_v36 = vadd.f32 %v294_v21, %v292_v20  ;;  %v1714_v20 = vor.u32 %v1943_v18, %v1711_v19  ;;  %v1502_v15 = vor.u32 %v1893_v7, %v1501_v6  ;;  %v1630_v16 = vor.u32 %v1925_v10, %v1629_v9  ;;  %v1485_v18 = vld [vmem:[#allocation11 + $0x8] sm:$0xf]  ;;  %v1889_v19 = vld [vmem:[#allocation11 + $0x14] sm:$0xf0]  ;;  %v1960_v6 = vld [vmem:[#allocation13 + $0x50] sm:$0xff] }
 0x13b   :  { %904 = vmatpush.bf16.msra.mxu0 %v1582_v13  ;;  %v1923_v13 = vld [vmem:[#allocation11 + $0x12c] sm:$0xf]  ;;  %v1972_v7 = vld [vmem:[#allocation13 + $0xb0] sm:$0xff] }
 0x13c   :  { %v301_v42 = vmax.f32 %v295_v36, 0.0  ;;  %v1550_v36 = vor.u32 %v1905_v34, %v1549_v33  ;;  %v1955_v59 = vld [vmem:[#allocation13 + $0x28] sm:$0xff] }
 0x13d   :  { %v282_v27 = vpop.f32.mrf.mxu1  ;;  %918 = vmatpush.bf16.msra.mxu1 %v1710_v14  ;;  %v1631_v14 = vld [vmem:[#allocation11 + $0x138] sm:$0xf0]  ;;  %v1963_v60 = vld [vmem:[#allocation13 + $0x68] sm:$0xff] }
 0x13e   :  { %v287_v32 = vpack.c.bf16 %v282_v27, %v282_v27  ;;  %v1567_v27 = vld [vmem:[#allocation11 + $0xb8] sm:$0xf0]  ;;  %v1951_v9 = vld [vmem:[#allocation13 + $0x8] sm:$0xff] }
 0x13f   :  { %v1570_v29 = vor.u32 %v1907_v26, %v1567_v27  ;;  %v1615_v26 = vld [vmem:[#allocation11 + $0x118] sm:$0xf0]  ;;  %v435_v27 = vpack.i.b16 %v2315_v1, %v2315_v1  ;;  %v1959_v10 = vld [vmem:[#allocation13 + $0x48] sm:$0xff] }
 0x140   :  { %v293_v37 = vunpack.c.l.bf16 %v287_v32  ;;  %v1698_v32 = vor.u32 %v1939_v30, %v1695_v31  ;;  %v1618_v34 = vor.u32 %v1919_v25, %v1615_v26  ;;  %v966_v25 = vld [vmem:[#allocation1] sm:$0xff]  ;;  %v967_v26 = vld [vmem:[#allocation1 + $0x9] sm:$0xff] }
 0x141   :  { %919 = vmatpush.bf16.msra.mxu1 %v1694_v28  ;;  %v1486_v28 = vor.u32 %v1889_v19, %v1485_v18  ;;  %v1977_v18 = vld [vmem:[#allocation13 + $0xd8] sm:$0xff]  ;;  %v1968_v19 = vld [vmem:[#allocation13 + $0x90] sm:$0xff] }
 0x142   :  { %v296_v41 = vadd.f32 %v294_v21, %v293_v37  ;;  %v1565_v21 = vld [vmem:[#allocation11 + $0xa8] sm:$0xf]  ;;  %v1937_v37 = vld [vmem:[#allocation11 + $0x194] sm:$0xf0] }
 0x143   :  { %v1566_v24 = vor.u32 %v1909_v22, %v1565_v21  ;;  %v1678_v40 = vor.u32 %v1937_v37, %v1677_v35  ;;  %v1634_v21 = vor.u32 %v1923_v13, %v1631_v14  ;;  %v1921_v22 = vld [vmem:[#allocation11 + $0x114] sm:$0xf0]  ;;  %v1950_v13 = vld [vmem:[#allocation13] sm:$0xff] }
 0x144   :  { %v302_v43 = vmax.f32 %v296_v41, 0.0  ;;  %v1554_v41 = vor.u32 %v1903_v38, %v1551_v39  ;;  %v1958_v14 = vld [vmem:[#allocation13 + $0x40] sm:$0xff] }
 0x145   :  { %905 = vmatpush.bf16.msra.mxu0 %v1566_v24  ;;  %920 = vmatpush.bf16.msra.mxu1 %v1678_v40  ;;  %v1487_v24 = vld [vmem:[#allocation11 + $0x18] sm:$0xf0] }
 0x146   :  { %v303_v44 = vpack.c.bf16 %v302_v43, %v301_v42  ;;  %v1935_v42 = vld [vmem:[#allocation11 + $0x18c] sm:$0xf]  ;;  %v1679_v43 = vld [vmem:[#allocation11 + $0x198] sm:$0xf0]  ;;  %v1490_v31 = vor.u32 %v1887_v23, %v1487_v24 }
 0x147   :  { %v1967_v23 = vld [vmem:[#allocation13 + $0x88] sm:$0xff] }
 0x148   :  { %408 = vmatmul.bf16.vlgmr.msra.gmra.mxu2 %v303_v44  ;;  %422 = vmatmul.bf16.vlgmr.msra.gmra.mxu3 %v303_v44  ;;  %v1682_v44 = vor.u32 %v1935_v42, %v1679_v43  ;;  %v1975_v24 = vld [vmem:[#allocation13 + $0xc8] sm:$0xff] }
 0x149   :  { %931 = vmatpush.bf16.msra.mxu2 %v1602_v4  ;;  %945 = vmatpush.bf16.msra.mxu3 %v1730_v8  ;;  %v1522_v4 = vor.u32 %v1895_v62, %v1519_v63  ;;  %v1650_v8 = vor.u32 %v1927_v0, %v1647_v5  ;;  %v1962_v62 = vld [vmem:[#allocation13 + $0x60] sm:$0xff]  ;;  %v1953_v63 = vld [vmem:[#allocation13 + $0x18] sm:$0xff]  ;;  %v1952_v5 = vld [vmem:[#allocation13 + $0x10] sm:$0xff] }
 0x14a   :  { %906 = vmatpush.bf16.msra.mxu0 %v1550_v36  ;;  %921 = vmatpush.bf16.msra.mxu1 %v1662_v52  ;;  %v437_v36 = vperm.slane %v435_v27, 0  ;;  %v1961_v0 = vld [vmem:[#allocation13 + $0x58] sm:$0xff] }
 0x14c   :  { %v445_v39 = vunpack.c.l.bf16 %v437_v36 }
 0x14d   :  { %932 = vmatpush.bf16.msra.mxu2 %v1586_v17  ;;  %946 = vmatpush.bf16.msra.mxu3 %v1714_v20  ;;  %v1506_v17 = vor.u32 %v1891_v11, %v1503_v12  ;;  %v1613_v20 = vld [vmem:[#allocation11 + $0x108] sm:$0xf] }
 0x14e   :  { %907 = vmatpush.bf16.msra.mxu0 %v1534_v48  ;;  %922 = vmatpush.bf16.msra.mxu1 %v1646_v3  ;;  %v1614_v30 = vor.u32 %v1921_v22, %v1613_v20  ;;  %v1973_v3 = vld [vmem:[#allocation13 + $0xb8] sm:$0xff]  ;;  %v1971_v11 = vld [vmem:[#allocation13 + $0xa8] sm:$0xff]  ;;  %v1976_v20 = vld [vmem:[#allocation13 + $0xd0] sm:$0xff] }
 0x14f   :  { %v1979_v12 = vld [vmem:[#allocation13 + $0xe8] sm:$0xff] }
 0x151   :  { %933 = vmatpush.bf16.msra.mxu2 %v1570_v29  ;;  %947 = vmatpush.bf16.msra.mxu3 %v1698_v32  ;;  %v438_v29 = vpack.i.b16 %v2317_v2, %v2317_v2 }
 0x152   :  { %908 = vmatpush.bf16.msra.mxu0 %v1518_v61  ;;  %923 = vmatpush.bf16.msra.mxu1 %v1630_v16  ;;  %v1954_v61 = vld [vmem:[#allocation13 + $0x20] sm:$0xff] }
 0x153   :  { %v440_v37 = vperm.slane %v438_v29, 0  ;;  %v1978_v16 = vld [vmem:[#allocation13 + $0xe0] sm:$0xff]  ;;  %v970_v29 = vpack.i.b16 %v966_v25, %v966_v25 }
 0x155   :  { %934 = vmatpush.bf16.msra.mxu2 %v1554_v41  ;;  %948 = vmatpush.bf16.msra.mxu3 %v1682_v44  ;;  %v446_v40 = vunpack.c.l.bf16 %v440_v37 }
 0x156   :  { %909 = vmatpush.bf16.msra.mxu0 %v1502_v15  ;;  %924 = vmatpush.bf16.msra.mxu1 %v1614_v30  ;;  %v1970_v15 = vld [vmem:[#allocation13 + $0xa0] sm:$0xff] }
 0x157   :  { %v1966_v30 = vld [vmem:[#allocation13 + $0x80] sm:$0xff] }
 0x159   :  { %935 = vmatpush.bf16.msra.mxu2 %v1538_v53  ;;  %949 = vmatpush.bf16.msra.mxu3 %v1666_v57  ;;  %v1956_v57 = vld [vmem:[#allocation13 + $0x30] sm:$0xff] }
 0x15a   :  { %910 = vmatpush.bf16.msra.mxu0 %v1486_v28 }
 0x15d   :  { %936 = vmatpush.bf16.msra.mxu2 %v1522_v4  ;;  %950 = vmatpush.bf16.msra.mxu3 %v1650_v8  ;;  %v1981_v4 = vld [vmem:[#allocation13 + $0xf8] sm:$0xff]  ;;  %v1980_v8 = vld [vmem:[#allocation13 + $0xf0] sm:$0xff] }
 0x161   :  { %937 = vmatpush.bf16.msra.mxu2 %v1506_v17  ;;  %951 = vmatpush.bf16.msra.mxu3 %v1634_v21  ;;  %v1969_v17 = vld [vmem:[#allocation13 + $0x98] sm:$0xff] }
 0x165   :  { %938 = vmatpush.bf16.msra.mxu2 %v1490_v31  ;;  %952 = vmatpush.bf16.msra.mxu3 %v1618_v34  ;;  %v1974_v31 = vld [vmem:[#allocation13 + $0xc0] sm:$0xff] }
 0x1cb   :  { %v409_v32 = vpop.f32.mrf.mxu2  ;;  %v423_v33 = vpop.f32.mrf.mxu3 }
 0x1cc   :  { %v429_v35 = vpack.c.bf16 %v423_v33, %v409_v32  ;;  %v973_v33 = vpack.i.b16 %v967_v26, %v967_v26 }
 0x1ce   :  { %v441_v1 = vunpack.c.l.bf16 %v429_v35  ;;  %v442_v38 = vunpack.c.h.bf16 %v429_v35 }
 0x1d0   :  { %v447_v43 = vadd.f32 %v445_v39, %v441_v1  ;;  %v448_v44 = vadd.f32 %v446_v40, %v442_v38  ;;  %v972_v1 = vperm.slane %v970_v29, 0  ;;  %v975_v38 = vperm.slane %v973_v33, 0 }
 0x1d2   :  { %v457_v49 = vmax.f32 %v447_v43, 0.0  ;;  %v458_v50 = vmax.f32 %v448_v44, 0.0  ;;  %v991_v43 = vunpack.c.l.bf16 %v975_v38 }
 0x1d3   :  { %v411_v2 = vpop.f32.mrf.mxu2  ;;  %v425_v41 = vpop.f32.mrf.mxu3 }
 0x1d4   :  { %v430_v42 = vpack.c.bf16 %v425_v41, %v411_v2 }
 0x1d6   :  { %v443_v45 = vunpack.c.l.bf16 %v430_v42  ;;  %v444_v46 = vunpack.c.h.bf16 %v430_v42 }
 0x1d8   :  { %v449_v47 = vadd.f32 %v445_v39, %v443_v45  ;;  %v450_v48 = vadd.f32 %v446_v40, %v444_v46  ;;  %v990_v40 = vunpack.c.l.bf16 %v972_v1 }
 0x1da   :  { %v459_v51 = vmax.f32 %v449_v47, 0.0  ;;  %v460_v52 = vmax.f32 %v450_v48, 0.0 }
 0x1dc   :  { %v461_v53 = vpack.c.bf16 %v459_v51, %v457_v49  ;;  %v462_v54 = vpack.c.bf16 %v460_v52, %v458_v50 }
 0x1de   :  { %855 = vmatmul.bf16.vlgmr.msrb.gmra.mxu0 %v461_v53  ;;  %869 = vmatmul.bf16.vlgmr.msrb.gmra.mxu1 %v462_v54 }
 0x1df   :  { %883 = vmatmul.bf16.vlgmr.msrb.gmra.mxu2 %v461_v53  ;;  %897 = vmatmul.bf16.vlgmr.msrb.gmra.mxu3 %v462_v54 }
 0x1e0   :  { %1286 = vmatpush.bf16.msrb.mxu0 %v1957_v55  ;;  %1300 = vmatpush.bf16.msrb.mxu1 %v1965_v56 }
 0x1e1   :  { %1314 = vmatpush.bf16.msrb.mxu2 %v1973_v3  ;;  %1328 = vmatpush.bf16.msrb.mxu3 %v1981_v4 }
 0x1e4   :  { %1287 = vmatpush.bf16.msrb.mxu0 %v1956_v57  ;;  %1301 = vmatpush.bf16.msrb.mxu1 %v1964_v58 }
 0x1e5   :  { %1315 = vmatpush.bf16.msrb.mxu2 %v1972_v7  ;;  %1329 = vmatpush.bf16.msrb.mxu3 %v1980_v8 }
 0x1e8   :  { %1288 = vmatpush.bf16.msrb.mxu0 %v1955_v59  ;;  %1302 = vmatpush.bf16.msrb.mxu1 %v1963_v60 }
 0x1e9   :  { %1316 = vmatpush.bf16.msrb.mxu2 %v1971_v11  ;;  %1330 = vmatpush.bf16.msrb.mxu3 %v1979_v12 }
 0x1ec   :  { %1289 = vmatpush.bf16.msrb.mxu0 %v1954_v61  ;;  %1303 = vmatpush.bf16.msrb.mxu1 %v1962_v62 }
 0x1ed   :  { %1317 = vmatpush.bf16.msrb.mxu2 %v1970_v15  ;;  %1331 = vmatpush.bf16.msrb.mxu3 %v1978_v16 }
 0x1ee   :  { %911 = vmatmul.bf16.vlgmr.msra.gmra.mxu0 %v461_v53  ;;  %925 = vmatmul.bf16.vlgmr.msra.gmra.mxu1 %v462_v54 }
 0x1ef   :  { %939 = vmatmul.bf16.vlgmr.msra.gmra.mxu2 %v461_v53  ;;  %953 = vmatmul.bf16.vlgmr.msra.gmra.mxu3 %v462_v54  ;;  %v968_v53 = vld [vmem:[#allocation1 + $0x12] sm:$0xff]  ;;  %v969_v54 = vld [vmem:[#allocation1 + $0x1b] sm:$0xff] }
 0x1f0   :  { %1290 = vmatpush.bf16.msrb.mxu0 %v1953_v63  ;;  %1304 = vmatpush.bf16.msrb.mxu1 %v1961_v0  ;;  %v976_v60 = vpack.i.b16 %v968_v53, %v968_v53  ;;  %v979_v61 = vpack.i.b16 %v969_v54, %v969_v54 }
 0x1f1   :  { %1318 = vmatpush.bf16.msrb.mxu2 %v1969_v17  ;;  %1332 = vmatpush.bf16.msrb.mxu3 %v1977_v18 }
 0x1f2   :  { %v978_v7 = vperm.slane %v976_v60, 0  ;;  %v981_v8 = vperm.slane %v979_v61, 0 }
 0x1f4   :  { %1291 = vmatpush.bf16.msrb.mxu0 %v1952_v5  ;;  %1305 = vmatpush.bf16.msrb.mxu1 %v1960_v6  ;;  %v992_v12 = vunpack.c.l.bf16 %v978_v7 }
 0x1f5   :  { %1319 = vmatpush.bf16.msrb.mxu2 %v1968_v19  ;;  %1333 = vmatpush.bf16.msrb.mxu3 %v1976_v20 }
 0x1f8   :  { %1292 = vmatpush.bf16.msrb.mxu0 %v1951_v9  ;;  %1306 = vmatpush.bf16.msrb.mxu1 %v1959_v10 }
 0x1f9   :  { %1320 = vmatpush.bf16.msrb.mxu2 %v1967_v23  ;;  %1334 = vmatpush.bf16.msrb.mxu3 %v1975_v24 }
 0x1fc   :  { %1293 = vmatpush.bf16.msrb.mxu0 %v1950_v13  ;;  %1307 = vmatpush.bf16.msrb.mxu1 %v1958_v14  ;;  %v993_v13 = vunpack.c.l.bf16 %v981_v8 }
 0x1fd   :  { %1321 = vmatpush.bf16.msrb.mxu2 %v1966_v30  ;;  %1335 = vmatpush.bf16.msrb.mxu3 %v1974_v31 }
 0x25b   :  { %v856_v21 = vpop.f32.mrf.mxu0  ;;  %v870_v22 = vpop.f32.mrf.mxu1 }
 0x25c   :  { %v871_v34 = vadd.f32 %v870_v22, %v856_v21 }
 0x262   :  { %v884_v27 = vpop.f32.mrf.mxu2  ;;  %v898_v28 = vpop.f32.mrf.mxu3 }
 0x263   :  { %v899_v32 = vadd.f32 %v898_v28, %v884_v27  ;;  %v858_v35 = vpop.f32.mrf.mxu0  ;;  %v872_v36 = vpop.f32.mrf.mxu1 }
 0x264   :  { %v873_v44 = vadd.f32 %v872_v36, %v858_v35 }
 0x265   :  { %v960_v37 = vpack.c.bf16 %v899_v32, %v871_v34  ;;  %v1996_v34 = vld [vmem:[%s2345_s10] ss:$0 sm:$0xff] }
 0x267   :  { %v982_v39 = vunpack.c.l.bf16 %v960_v37  ;;  %v983_v42 = vunpack.c.h.bf16 %v960_v37 }
 0x269   :  { %v994_v47 = vadd.f32 %v990_v40, %v982_v39  ;;  %v995_v50 = vadd.f32 %v991_v43, %v983_v42 }
 0x26a   :  { %v886_v2 = vpop.f32.mrf.mxu2  ;;  %v900_v41 = vpop.f32.mrf.mxu3 }
 0x26b   :  { %v901_v45 = vadd.f32 %v900_v41, %v886_v2  ;;  %v912_v48 = vpop.f32.mrf.mxu0  ;;  %v926_v49 = vpop.f32.mrf.mxu1  ;;  %v1014_v57 = vmax.f32 %v994_v47, 0.0  ;;  %v1015_v62 = vmax.f32 %v995_v50, 0.0 }
 0x26c   :  { %v927_v4 = vadd.f32 %v926_v49, %v912_v48 }
 0x26d   :  { %v962_v46 = vpack.c.bf16 %v901_v45, %v873_v44 }
 0x26f   :  { %v986_v51 = vunpack.c.l.bf16 %v962_v46  ;;  %v987_v52 = vunpack.c.h.bf16 %v962_v46 }
 0x271   :  { %v998_v55 = vadd.f32 %v990_v40, %v986_v51  ;;  %v999_v56 = vadd.f32 %v991_v43, %v987_v52 }
 0x272   :  { %v940_v58 = vpop.f32.mrf.mxu2  ;;  %v954_v59 = vpop.f32.mrf.mxu3 }
 0x273   :  { %v1018_v63 = vmax.f32 %v998_v55, 0.0  ;;  %v1019_v0 = vmax.f32 %v999_v56, 0.0  ;;  %v955_v3 = vadd.f32 %v954_v59, %v940_v58  ;;  %v914_v10 = vpop.f32.mrf.mxu0  ;;  %v928_v11 = vpop.f32.mrf.mxu1 }
 0x274   :  { %v929_v18 = vadd.f32 %v928_v11, %v914_v10 }
 0x275   :  { %v1022_v5 = vpack.c.bf16 %v1018_v63, %v1014_v57  ;;  %v1023_v6 = vpack.c.bf16 %v1019_v0, %v1015_v62  ;;  %v961_v9 = vpack.c.bf16 %v955_v3, %v927_v4 }
 0x277   :  { %1294 = vmatmul.bf16.vlgmr.msrb.gmra.mxu0 %v1022_v5  ;;  %1308 = vmatmul.bf16.vlgmr.msrb.gmra.mxu1 %v1023_v6  ;;  %v984_v16 = vunpack.c.l.bf16 %v961_v9  ;;  %v985_v17 = vunpack.c.h.bf16 %v961_v9 }
 0x279   :  { %v996_v21 = vadd.f32 %v992_v12, %v984_v16  ;;  %v997_v22 = vadd.f32 %v993_v13, %v985_v17 }
 0x27a   :  { %v942_v14 = vpop.f32.mrf.mxu2  ;;  %v956_v15 = vpop.f32.mrf.mxu3 }
 0x27b   :  { %v957_v19 = vadd.f32 %v956_v15, %v942_v14  ;;  %v1016_v27 = vmax.f32 %v996_v21, 0.0  ;;  %v1017_v28 = vmax.f32 %v997_v22, 0.0 }
 0x27d   :  { %v963_v20 = vpack.c.bf16 %v957_v19, %v929_v18 }
 0x27f   :  { %v988_v23 = vunpack.c.l.bf16 %v963_v20  ;;  %v989_v24 = vunpack.c.h.bf16 %v963_v20 }
 0x281   :  { %v1000_v25 = vadd.f32 %v992_v12, %v988_v23  ;;  %v1001_v26 = vadd.f32 %v993_v13, %v989_v24 }
 0x283   :  { %v1020_v29 = vmax.f32 %v1000_v25, 0.0  ;;  %v1021_v30 = vmax.f32 %v1001_v26, 0.0 }
 0x285   :  { %v1024_v31 = vpack.c.bf16 %v1020_v29, %v1016_v27  ;;  %v1025_v32 = vpack.c.bf16 %v1021_v30, %v1017_v28 }
 0x287   :  { %1322 = vmatmul.bf16.vlgmr.msrb.gmra.mxu2 %v1024_v31  ;;  %1336 = vmatmul.bf16.vlgmr.msrb.gmra.mxu3 %v1025_v32 }
 0x2f4   :  { %v1295_v33 = vpop.f32.mrf.mxu0  ;;  %v1309_v36 = vpop.f32.mrf.mxu1 }
 0x2f5   :  { %v1296_v35 = vadd.f32 %v1996_v34, %v1295_v33 }
 0x2f7   :  { %v1310_v37 = vadd.f32 %v1309_v36, %v1296_v35 }
 0x2fc   :  { %v1297_v1 = vpop.f32.mrf.mxu0  ;;  %v1311_v42 = vpop.f32.mrf.mxu1 }
 0x2fd   :  { %v1298_v2 = vadd.f32 %v1996_v34, %v1297_v1 }
 0x2ff   :  { %v1312_v43 = vadd.f32 %v1311_v42, %v1298_v2 }
 0x30a   :  { %v1323_v38 = vpop.f32.mrf.mxu2  ;;  %v1337_v39 = vpop.f32.mrf.mxu3 }
 0x30b   :  { %v1324_v40 = vadd.f32 %v1323_v38, %v1310_v37 }
 0x30d   :  { %v1338_v41 = vadd.f32 %v1337_v39, %v1324_v40 }
 0x30f   :  { %1342 = vst [vmem:[#allocation14] sm:$0xff] %v1338_v41 }
 0x312   :  { %v1325_v44 = vpop.f32.mrf.mxu2  ;;  %v1339_v46 = vpop.f32.mrf.mxu3 }
 0x313   :  { %v1326_v45 = vadd.f32 %v1325_v44, %v1312_v43 }
 0x315   :  { %v1340_v47 = vadd.f32 %v1339_v46, %v1326_v45 }
 0x317   :  { %1343 = vst [vmem:[#allocation14 + $0x8] sm:$0xff] %v1340_v47 }
 0x318   :  { %1356 = dma.vmem_to_hbm [thread:$0]  %s1349_s17, 256, %s1351_s20, [#allocation4], %s2209_s29, %s2209_s29, %s2210_s30  }
 0x319   :  { %2197 = dma.done.wait [#allocation4], 256  }
 0x31a   :  { %2198 = vsyncadd [#allocation4], 4294967040 }
 0x31b   :  { %1361 = vsyncpa [#allocation3], 1 }
 0x31c   :  { %1362 = vsyncpa [#allocation6], 1 }
 0x31d   :  { %1363 = vsyncpa [#allocation9], 1 }
 0x31e   :  { %1364 = vsyncpa [#allocation12], 1 }
 0x31f   :  { %1365 = vsyncpa [#allocation4], 1 }

</bundles_post_ra>
